<compile_context>
chip_gen: v5e
topology: v5e:2x2
jax: 0.10.0
libtpu: 0.0.40
codegen_flags: <defaults>
</compile_context>

<pallas_src>
import jax
import jax.numpy as jnp
from jax.experimental import pallas as pl
from jax.experimental.pallas import tpu as pltpu


def _round_up(n: int, m: int) -> int:
    return pl.cdiv(n, m) * m


def mlp_kernel(x_ref, w1_ref, b1_ref, w2_ref, b2_ref, o_ref):
    # fc1 in transposed orientation, contracting over In, batch on the LANE axis:
    # w1 (In, H) [contract dim 0] x x (tb, In) [contract dim 1] -> h_t (H, tb).
    # bf16 operands, f32 MXU accumulation.
    h_t = jax.lax.dot_general(
        w1_ref[...], x_ref[...],
        dimension_numbers=(((0,), (1,)), ((), ())),
        preferred_element_type=jnp.float32,
    )
    # Bias + ReLU on the VPU in f32; b1 is (H, 1) and lane-broadcasts over the batch.
    h_t = jnp.maximum(h_t + b1_ref[...], 0.0)
    # fc2: (1, H) @ (H, tb) -> (1, tb).  Lane-dense output slab (unmasked stores).
    out = jax.lax.dot_general(
        w2_ref[...], h_t,
        dimension_numbers=(((1,), (0,)), ((), ())),
        preferred_element_type=jnp.float32,
    )
    # Scalar bias from SMEM.
    o_ref[...] = (out + b2_ref[0, 0]).astype(o_ref.dtype)


def _choose_tile(B: int, tb) -> int:
    if tb is None:
        tb = 4096
    # Keep nb >= 2 whenever possible so v7x's two TensorCores both get a share of
    # the batch grid (no-op on single-TC v5e/v6e); always 128-lane aligned.
    tb = min(tb, _round_up(pl.cdiv(B, 2), 128))
    return max(128, _round_up(tb, 128))


def mlp_forward(x, w1, b1, w2, b2, *, tb=None):
    """fc2(relu(fc1(x))).  x: [B, In], w1: [In, H], b1: [1, H] or [H], w2: [H, 1], b2: scalar-ish."""
    B, In = x.shape
    H = w1.shape[1]

    tb = _choose_tile(B, tb)
    nb = pl.cdiv(B, tb)

    # bf16 MXU operands (don't upcast if the caller already supplies bf16).
    xb = x if x.dtype == jnp.bfloat16 else x.astype(jnp.bfloat16)
    w1b = w1 if w1.dtype == jnp.bfloat16 else w1.astype(jnp.bfloat16)
    # Elementwise / fc2 operands stay f32 for precision; all are tiny.
    b1c = b1.astype(jnp.float32).reshape(H, 1)       # lane-broadcast bias for (H, tb) layout
    w2r = w2.astype(jnp.float32).reshape(1, H)       # (H, 1) -> row (1, H)
    b2s = b2.astype(jnp.float32).reshape(1, 1)       # scalar, lives in SMEM

    cost = pl.CostEstimate(
        flops=2 * B * In * H + 2 * B * H,
        transcendentals=0,
        bytes_accessed=(xb.size * 2 + w1b.size * 2
                        + (b1c.size + w2r.size + b2s.size) * 4
                        + nb * tb * 4),
    )

    out = pl.pallas_call(
        mlp_kernel,
        out_shape=jax.ShapeDtypeStruct((nb, 1, tb), jnp.float32),
        grid=(nb,),
        in_specs=[
            # x: one (tb, In) tile per grid step -> double-buffered HBM streaming.
            # Ragged last block: garbage rows only feed output lanes sliced off below.
            pl.BlockSpec((tb, In), lambda i: (i, 0)),
            # Weights/biases: constant block index -> loaded once, VMEM-resident.
            pl.BlockSpec((In, H), lambda i: (0, 0)),
            pl.BlockSpec((H, 1), lambda i: (0, 0)),
            pl.BlockSpec((1, H), lambda i: (0, 0)),
            # Scalar fc2 bias in SMEM.
            pl.BlockSpec(memory_space=pltpu.MemorySpace.SMEM),
        ],
        # Lane-dense output slab: kernel sees a (1, tb) block (leading dim squeezed).
        out_specs=pl.BlockSpec((None, 1, tb), lambda i: (i, 0, 0)),
        compiler_params=pltpu.CompilerParams(
            dimension_semantics=("parallel",),
        ),
        cost_estimate=cost,
    )(xb, w1b, b1c, w2r, b2s)

    # Back to the PyTorch-equivalent (B, 1) contract; drop ragged-tile lanes.
    return out.reshape(-1)[:B].reshape(B, 1)


def init_params(key, input_size, hidden_size, dtype=jnp.float32):
    # Deterministic init mimicking nn.Linear's uniform(-1/sqrt(fan_in), 1/sqrt(fan_in)).
    k1, k2, k3, k4 = jax.random.split(key, 4)
    bound1 = 1.0 / (input_size ** 0.5)
    bound2 = 1.0 / (hidden_size ** 0.5)
    # Stored already transposed relative to PyTorch's [out, in] convention.
    w1 = jax.random.uniform(k1, (input_size, hidden_size), dtype, -bound1, bound1)
    b1 = jax.random.uniform(k2, (1, hidden_size), dtype, -bound1, bound1)
    w2 = jax.random.uniform(k3, (hidden_size, 1), dtype, -bound2, bound2)
    b2 = jax.random.uniform(k4, (1, 1), dtype, -bound2, bound2)
    return w1, b1, w2, b2


if __name__ == "__main__":
    key = jax.random.PRNGKey(0)
    kx, kp, kx2 = jax.random.split(key, 3)

    # Small shapes consistent with the module's MLP head (hidden_size=mlp_hidden=32).
    batch, input_size, hidden_size = 8, 32, 32
    x = jax.random.normal(kx, (batch, input_size), jnp.float32)
    w1, b1, w2, b2 = init_params(kp, input_size, hidden_size)

    out = jax.block_until_ready(mlp_forward(x, w1, b1, w2, b2))

    # Reference with matching bf16 rounding of the MXU operands (f32 accumulate).
    xb = x.astype(jnp.bfloat16).astype(jnp.float32)
    w1b = w1.astype(jnp.bfloat16).astype(jnp.float32)
    ref = jnp.maximum(xb @ w1b + b1, 0.0) @ w2 + b2
    assert out.shape == (batch, 1)
    assert jnp.allclose(out, ref, atol=1e-3, rtol=1e-3)

    # Exercise the multi-tile grid path (nb >= 2, ragged last block).
    x2 = jax.random.normal(kx2, (300, input_size), jnp.float32)
    out2 = jax.block_until_ready(mlp_forward(x2, w1, b1, w2, b2))
    x2b = x2.astype(jnp.bfloat16).astype(jnp.float32)
    ref2 = jnp.maximum(x2b @ w1b + b1, 0.0) @ w2 + b2
    assert out2.shape == (300, 1)
    assert jnp.allclose(out2, ref2, atol=1e-3, rtol=1e-3)

    print("KERNEL_OK")
</pallas_src>

<mosaic_0001>
module attributes {stable_mosaic.version = 11 : i64} {
  func.func @mlp_kernel(%arg0: i32, %arg1: memref<128x32xbf16, #tpu.memory_space<vmem>>, %arg2: memref<32x32xbf16, #tpu.memory_space<vmem>>, %arg3: memref<32x1xf32, #tpu.memory_space<vmem>>, %arg4: memref<1x32xf32, #tpu.memory_space<vmem>>, %arg5: memref<1x1xf32, #tpu.memory_space<smem>>, %arg6: memref<1x1x128xf32, #tpu.memory_space<vmem>>) attributes {dimension_semantics = [#tpu.dimension_semantics<parallel>], iteration_bounds = array<i64: 1>, scalar_prefetch = 0 : i64, scratch_operands = 0 : i64, tpu.core_type = #tpu.core_type<tc>, window_params = [{transform_indices = @transform_0, window_bounds = array<i64: 128, 32>}, {pipeline_mode = #tpu.pipeline_mode<synchronous>, transform_indices = @transform_1, window_bounds = array<i64: 32, 32>}, {pipeline_mode = #tpu.pipeline_mode<synchronous>, transform_indices = @transform_2, window_bounds = array<i64: 32, 1>}, {pipeline_mode = #tpu.pipeline_mode<synchronous>, transform_indices = @transform_3, window_bounds = array<i64: 1, 32>}, {transform_indices = @transform_4, window_bounds = array<i64: 1, 1>}, {transform_indices = @transform_5, window_bounds = array<i64: 1, 1, 128>}]} {
    %c0 = arith.constant 0 : index
    %c0_0 = arith.constant 0 : index
    %0 = vector.load %arg2[%c0, %c0_0] : memref<32x32xbf16, #tpu.memory_space<vmem>>, vector<32x32xbf16>
    %c0_1 = arith.constant 0 : index
    %c0_2 = arith.constant 0 : index
    %1 = vector.load %arg1[%c0_1, %c0_2] : memref<128x32xbf16, #tpu.memory_space<vmem>>, vector<128x32xbf16>
    %cst = arith.constant dense<0.000000e+00> : vector<32x128xf32>
    %2 = tpu.matmul %0, %1, %cst {dimension_numbers = #tpu.dot_dimension_numbers<[0], [1], [1], [0], [0, 1, 1, 0], [], []>} : vector<32x32xbf16>, vector<128x32xbf16>, vector<32x128xf32> -> vector<32x128xf32>
    %c0_3 = arith.constant 0 : index
    %c0_4 = arith.constant 0 : index
    %3 = vector.load %arg3[%c0_3, %c0_4] : memref<32x1xf32, #tpu.memory_space<vmem>>, vector<32x1xf32>
    %4 = vector.broadcast %3 : vector<32x1xf32> to vector<32x128xf32>
    %5 = arith.addf %2, %4 : vector<32x128xf32>
    %cst_5 = arith.constant 0.000000e+00 : f32
    %6 = vector.broadcast %cst_5 : f32 to vector<32x128xf32>
    %7 = arith.maximumf %5, %6 : vector<32x128xf32>
    %c0_6 = arith.constant 0 : index
    %c0_7 = arith.constant 0 : index
    %8 = vector.load %arg4[%c0_6, %c0_7] : memref<1x32xf32, #tpu.memory_space<vmem>>, vector<1x32xf32>
    %cst_8 = arith.constant dense<0.000000e+00> : vector<1x128xf32>
    %9 = tpu.matmul %8, %7, %cst_8 {dimension_numbers = #tpu.dot_dimension_numbers<[1], [0], [0], [1], [0, 0, 1, 1], [], []>} : vector<1x32xf32>, vector<32x128xf32>, vector<1x128xf32> -> vector<1x128xf32>
    %c0_9 = arith.constant 0 : index
    %c0_10 = arith.constant 0 : index
    %10 = memref.load %arg5[%c0_9, %c0_10] : memref<1x1xf32, #tpu.memory_space<smem>>
    %11 = vector.broadcast %10 : f32 to vector<1x128xf32>
    %12 = arith.addf %9, %11 : vector<1x128xf32>
    %c0_11 = arith.constant 0 : index
    %c0_12 = arith.constant 0 : index
    %c0_13 = arith.constant 0 : index
    %13 = vector.load %arg6[%c0_11, %c0_12, %c0_13] : memref<1x1x128xf32, #tpu.memory_space<vmem>>, vector<1x1x128xf32>
    %14 = vector.shape_cast %13 : vector<1x1x128xf32> to vector<1x128xf32>
    %15 = vector.shape_cast %12 : vector<1x128xf32> to vector<1x1x128xf32>
    tpu.vector_store %arg6[%c0_11, %c0_12, %c0_13], %15 {strides = array<i32>} : memref<1x1x128xf32, #tpu.memory_space<vmem>>, vector<1x1x128xf32>,
    return
  }
  func.func @transform_0(%arg0: i32) -> (i32, i32) {
    %c0_i32 = arith.constant 0 : i32
    %c0_i32_0 = arith.constant 0 : i32
    return %arg0, %c0_i32 : i32, i32
  }
  func.func @transform_1(%arg0: i32) -> (i32, i32) {
    %c0_i32 = arith.constant 0 : i32
    %c0_i32_0 = arith.constant 0 : i32
    %c0_i32_1 = arith.constant 0 : i32
    return %c0_i32, %c0_i32_0 : i32, i32
  }
  func.func @transform_2(%arg0: i32) -> (i32, i32) {
    %c0_i32 = arith.constant 0 : i32
    %c0_i32_0 = arith.constant 0 : i32
    %c0_i32_1 = arith.constant 0 : i32
    return %c0_i32, %c0_i32_0 : i32, i32
  }
  func.func @transform_3(%arg0: i32) -> (i32, i32) {
    %c0_i32 = arith.constant 0 : i32
    %c0_i32_0 = arith.constant 0 : i32
    %c0_i32_1 = arith.constant 0 : i32
    return %c0_i32, %c0_i32_0 : i32, i32
  }
  func.func @transform_4(%arg0: i32) -> (i32, i32) {
    %c0_i32 = arith.constant 0 : i32
    %c0_i32_0 = arith.constant 0 : i32
    %c0_i32_1 = arith.constant 0 : i32
    return %c0_i32, %c0_i32_0 : i32, i32
  }
  func.func @transform_5(%arg0: i32) -> (i32, i32, i32) {
    %c0_i32 = arith.constant 0 : i32
    %c0_i32_0 = arith.constant 0 : i32
    %c0_i32_1 = arith.constant 0 : i32
    return %arg0, %c0_i32, %c0_i32_0 : i32, i32, i32
  }
}

</mosaic_0001>

<bundles_post_ra>
// kernel: tpu_custom_call.1
= control target key start
LH: loop header
LB: loop body
LE: loop exit
PB: predicated region body
PF: predicated region fallthrough
CT: control target
= control target key end

     0   :  { %vm135_vm0 = vcmask 261120   ;;  %s418_s0 = inlined_call_operand.vmem [shape: bf16[8,32], index: 0, kind: input, shape index: {}]   ;;  %s419_s1 = inlined_call_operand.vmem [shape: bf16[32,32], index: 1, kind: input, shape index: {}]   ;;  %s420_s2 = inlined_call_operand.vmem [shape: f32[32,1], index: 2, kind: input, shape index: {}]   ;;  %s421_s3 = inlined_call_operand.vmem [shape: f32[1,32], index: 3, kind: input, shape index: {}]   ;;  %s422_s4 = inlined_call_operand.<no memory space> [shape: f32[1,1], index: 4, kind: input, shape index: {}]   ;;  %s423_s5 = inlined_call_operand.hbm [shape: f32[1,1,128], index: 5, kind: output, shape index: {}]  }
   0x1   :  { %v275_v0 = vld [vmem:[%s419_s1] sm:$0xff]  ;;  %v284_v1 = vld [vmem:[%s418_s0 + $0x38] sm:$0xff] }
   0x2   :  { %79 = vxpose.xlu0.c.b16.start [1/2] (short) (narrow) %v275_v0, 32  ;;  %v164_v2 = vsel %vm135_vm0, %v284_v1, 0 }
   0x3   :  { %11 = vsyncpa [#allocation4], 0  ;;  %166 = vmatpush.bf16.xpose.msra.mxu0 %v164_v2  ;;  %285 = vmatpush.bf16.xpose.msra.mxu2 %v164_v2  ;;  %v283_v3 = vld [vmem:[%s418_s0 + $0x30] sm:$0xff]  ;;  %v282_v5 = vld [vmem:[%s418_s0 + $0x28] sm:$0xff]  ;;  %v324_v20 = vmov 0   ;;  %v191_v42 = vstv %s422_s4  ;;  %s325_s22 = smov [#allocation3]  }
   0x4   :  { %v161_v4 = vsel %vm135_vm0, %v283_v3, 0  ;;  %v276_v6 = vld [vmem:[%s419_s1 + $0x8] sm:$0xff]  ;;  %v158_v7 = vsel %vm135_vm0, %v282_v5, 0  ;;  %v281_v8 = vld [vmem:[%s418_s0 + $0x20] sm:$0xff]  ;;  %v280_v10 = vld [vmem:[%s418_s0 + $0x18] sm:$0xff]  ;;  %295 = vset.pattern.permute.xlu1 %v324_v20  ;;  %296 = vset.pattern.permute.xlu2 %v324_v20  ;;  %s221_s23 = sshll.u32 %s325_s22, 4  ;;  %s222_s23 = int_to_ptr.vmem [resolvable:$true] %s221_s23 }
   0x5   :  { %v155_v9 = vsel %vm135_vm0, %v281_v8, 0  ;;  %v152_v11 = vsel %vm135_vm0, %v280_v10, 0  ;;  %v279_v12 = vld [vmem:[%s418_s0 + $0x10] sm:$0xff]  ;;  %v278_v14 = vld [vmem:[%s418_s0 + $0x8] sm:$0xff]  ;;  %v277_v16 = vld [vmem:[%s418_s0] sm:$0xff]  ;;  %s223_s26 = sshll.u32 %s423_s5, 4  ;;  %s224_s26 = int_to_ptr.hbm [resolvable:$true] %s223_s26 }
   0x6   :  { %v149_v13 = vsel %vm135_vm0, %v279_v12, 0  ;;  %v146_v15 = vsel %vm135_vm0, %v278_v14, 0  ;;  %v143_v17 = vsel %vm135_vm0, %v277_v16, 0  ;;  %v46_v18 = vld [vmem:[%s420_s2 + $0x18] sm:$0xff]  ;;  %v44_v19 = vld [vmem:[%s420_s2 + $0x8] sm:$0xff]  ;;  %v45_v21 = vld [vmem:[%s420_s2 + $0x10] sm:$0xff] }
   0x7   :  { %64 = vperm.xlu1 %295, %v46_v18   ;;  %54 = vperm.xlu2 %296, %v44_v19   ;;  %v43_v22 = vld [vmem:[%s420_s2] sm:$0xff] }
   0x8   :  { %v189_v41 = vld [vmem:[%s421_s3] sm:$0x1] }
   0xb   :  { %167 = vmatpush.bf16.xpose.msra.mxu0 %v161_v4  ;;  %286 = vmatpush.bf16.xpose.msra.mxu2 %v161_v4 }
   0xf   :  { %59 = vperm.xlu1 %295, %v45_v21   ;;  %49 = vperm.xlu2 %296, %v43_v22  }
  0x12   :  { %80 = vxpose.xlu0.c.b16.end [2/2] (short) (narrow) %v276_v6, 32 }
  0x13   :  { %168 = vmatpush.bf16.xpose.msra.mxu0 %v158_v7  ;;  %287 = vmatpush.bf16.xpose.msra.mxu2 %v158_v7 }
  0x1b   :  { %169 = vmatpush.bf16.xpose.msra.mxu0 %v155_v9  ;;  %288 = vmatpush.bf16.xpose.msra.mxu2 %v155_v9 }
  0x23   :  { %170 = vmatpush.bf16.xpose.msra.mxu0 %v152_v11  ;;  %289 = vmatpush.bf16.xpose.msra.mxu2 %v152_v11 }
  0x2b   :  { %171 = vmatpush.bf16.xpose.msra.mxu0 %v149_v13  ;;  %290 = vmatpush.bf16.xpose.msra.mxu2 %v149_v13 }
  0x33   :  { %172 = vmatpush.bf16.xpose.msra.mxu0 %v146_v15  ;;  %291 = vmatpush.bf16.xpose.msra.mxu2 %v146_v15 }
  0x3b   :  { %173 = vmatpush.bf16.xpose.msra.mxu0 %v143_v17  ;;  %292 = vmatpush.bf16.xpose.msra.mxu2 %v143_v17 }
  0x61   :  { %v55_v27 = vpop.permute.xlu2 %54 }
  0x69   :  { %v50_v34 = vpop.permute.xlu2 %49 }
  0x79   :  { %297 = vset.pattern.permute.xlu0 %v324_v20  ;;  %v65_v25 = vpop.permute.xlu1 %64 }
  0x81   :  { %v60_v29 = vpop.permute.xlu1 %59 }
  0xae   :  { %v87_v23 = vpop.trf.xlu0 }
  0xaf   :  { %272 = vmatmul.msk.bf16.vlgmr.msra.gmra.mxu0 %vm135_vm0, %v87_v23 }
  0xbe   :  { %v88_v24 = vpop.trf.xlu0 }
  0xbf   :  { %273 = vmatmul.msk.bf16.vlgmr.msra.gmra.mxu2 %vm135_vm0, %v88_v24 }
 0x12c   :  { %v175_v26 = vpop.f32.mrf.mxu0 }
 0x12d   :  { %v176_v37 = vadd.f32 %v175_v26, %v50_v34 }
 0x12f   :  { %v185_v40 = vmax.f32 %v176_v37, 0.0 }
 0x134   :  { %v177_v30 = vpop.f32.mrf.mxu0 }
 0x135   :  { %v178_v35 = vadd.f32 %v177_v30, %v55_v27 }
 0x137   :  { %v186_v39 = vmax.f32 %v178_v35, 0.0 }
 0x142   :  { %v180_v28 = vpop.f32.mrf.mxu2 }
 0x143   :  { %v181_v32 = vadd.f32 %v180_v28, %v60_v29 }
 0x145   :  { %v187_v38 = vmax.f32 %v181_v32, 0.0 }
 0x14a   :  { %v182_v31 = vpop.f32.mrf.mxu2 }
 0x14b   :  { %v183_v33 = vadd.f32 %v182_v31, %v65_v25 }
 0x14d   :  { %v188_v36 = vmax.f32 %v183_v33, 0.0 }
 0x14f   :  { %207 = vmatpush.msra.mxu1 %v188_v36 }
 0x151   :  { %208 = vmatpush.msra.mxu1 %v187_v38 }
 0x153   :  { %209 = vmatpush.msra.mxu1 %v186_v39 }
 0x155   :  { %210 = vmatpush.msra.mxu1 %v185_v40 }
 0x156   :  { %274 = vmatmul.msk.f32.vlgmr.msra.gmra.mxu1 %vm135_vm0, %v189_v41 }
 0x1d3   :  { %v212_v43 = vpop.f32.mrf.mxu1 }
 0x1d4   :  { %v213_v44 = vadd.f32 %v212_v43, %v191_v42 }
 0x1d6   :  { %215 = vst [vmem:[#allocation3] sm:$0x1] %v213_v44 }
 0x1d7   :  { %226 = dma.vmem_to_hbm [thread:$0]  %s222_s23, 16, %s224_s26, [#allocation4]  }
 0x1d8   :  { %322 = dma.done.wait [#allocation4], 16  }
 0x1d9   :  { %323 = vsyncadd [#allocation4], 4294967280 }
 0x1da   :  { %231 = vsyncpa [#allocation4], 1 }

</bundles_post_ra>
